<compile_context>
chip_gen: v5e
topology: v5e:2x2
jax: 0.10.0
libtpu: 0.0.40
codegen_flags: <defaults>
</compile_context>

<pallas_src>
import functools

import jax
import jax.numpy as jnp
from jax.experimental import pallas as pl
from jax.experimental.pallas import tpu as pltpu

EPS = 1e-5                        # nn.BatchNorm2d default eps
VMEM_LIMIT = 32 * 1024 * 1024     # explicit scoped-VMEM budget, safe on v5e/v6e/v7x
DEFAULT_ROW_TILE = 1024           # M-tile rows: fits v7x VMEM, amortizes grid overhead


def _pick_row_tile(m, target=DEFAULT_ROW_TILE):
    """Largest power-of-two tile <= target that divides m (sublane-aligned)."""
    t = min(target, m)
    while t >= 16:
        if m % t == 0:
            return t
        t //= 2
    return m


# ----------------------------------------------------------------------------
# Pallas kernels
# ----------------------------------------------------------------------------
def _conv_stats_kernel(x_ref, w_ref, y_ref, s_ref, ss_ref):
    """Pass A: bf16 matmul tile + grid-resident per-channel sum / sum-of-squares."""
    y = jnp.dot(x_ref[...], w_ref[...], preferred_element_type=jnp.float32)
    y_ref[...] = y

    @pl.when(pl.program_id(0) == 0)
    def _init():
        s_ref[...] = jnp.zeros_like(s_ref)
        ss_ref[...] = jnp.zeros_like(ss_ref)

    s_ref[...] += jnp.sum(y, axis=0, keepdims=True)
    ss_ref[...] += jnp.sum(y * y, axis=0, keepdims=True)


def _bn_scale_shift(s, ss, g, b, inv_m):
    """Fold global batch stats into per-channel scale/shift (all f32)."""
    mu = s * inv_m
    var = ss * inv_m - mu * mu          # biased variance, E[y^2] - E[y]^2
    scale = g * jax.lax.rsqrt(var + EPS)
    shift = b - mu * scale
    return scale, shift


def _bn_act_kernel(y_ref, s_ref, ss_ref, g_ref, b_ref, o_ref, *, inv_m, relu):
    """Pass B: normalize with global batch stats (+ ReLU)."""
    scale, shift = _bn_scale_shift(s_ref[...], ss_ref[...],
                                   g_ref[...], b_ref[...], inv_m)
    y = y_ref[...] * scale + shift
    if relu:
        y = jnp.maximum(y, 0.0)
    o_ref[...] = y.astype(o_ref.dtype)


def _bn_add_relu_kernel(y_ref, s_ref, ss_ref, g_ref, b_ref, r_ref, o_ref, *, inv_m):
    """Pass B (block tail): normalize + residual add + ReLU."""
    scale, shift = _bn_scale_shift(s_ref[...], ss_ref[...],
                                   g_ref[...], b_ref[...], inv_m)
    y = y_ref[...] * scale + shift + r_ref[...].astype(jnp.float32)
    o_ref[...] = jnp.maximum(y, 0.0).astype(o_ref.dtype)


def _avgpool_linear_kernel(x_ref, w_ref, b_ref, o_ref):
    # x: (N, H*W, C) -> global average pool over spatial, then Linear.
    pooled = jnp.mean(x_ref[...].astype(jnp.float32), axis=1)      # (N, C)
    o_ref[...] = (jnp.dot(pooled, w_ref[...], preferred_element_type=jnp.float32)
                  + b_ref[...])


# ----------------------------------------------------------------------------
# Kernel wrappers
# ----------------------------------------------------------------------------
def conv_bn_act(patches, w_mat, gamma, beta, *, relu=True, residual=None,
                out_dtype=jnp.bfloat16):
    """Conv (im2col matmul) + training-mode BatchNorm (+ residual) (+ ReLU).

    patches:  (M, K)    bf16 im2col rows (row-major over N, Ho, Wo)
    w_mat:    (K, Cout) bf16
    gamma/beta: (1, Cout) f32
    residual: optional (M, Cout) array added before the final ReLU
    """
    m, k = patches.shape
    cout = w_mat.shape[1]
    mt = _pick_row_tile(m)
    grid = (m // mt,)

    row_spec = pl.BlockSpec((mt, cout), lambda i: (i, 0))
    chan_spec = pl.BlockSpec((1, cout), lambda i: (0, 0))

    # ---- pass A: matmul + per-channel sum / sumsq (grid-resident accumulators)
    y, s, ss = pl.pallas_call(
        _conv_stats_kernel,
        grid=grid,
        in_specs=[pl.BlockSpec((mt, k), lambda i: (i, 0)),
                  pl.BlockSpec((k, cout), lambda i: (0, 0))],
        out_specs=[row_spec, chan_spec, chan_spec],
        out_shape=[jax.ShapeDtypeStruct((m, cout), jnp.float32),
                   jax.ShapeDtypeStruct((1, cout), jnp.float32),
                   jax.ShapeDtypeStruct((1, cout), jnp.float32)],
        compiler_params=pltpu.CompilerParams(
            dimension_semantics=("arbitrary",),   # stats accumulate across M tiles
            vmem_limit_bytes=VMEM_LIMIT),
        cost_estimate=pl.CostEstimate(
            flops=2 * m * k * cout,
            transcendentals=0,
            bytes_accessed=m * k * 2 + k * cout * 2 + m * cout * 4),
    )(patches, w_mat)

    # ---- pass B: normalize (+ residual) (+ ReLU), tiled & parallel over M
    if residual is None:
        kernel = functools.partial(_bn_act_kernel, inv_m=1.0 / m, relu=relu)
        args = (y, s, ss, gamma, beta)
        in_specs = [row_spec, chan_spec, chan_spec, chan_spec, chan_spec]
        res_bytes = 0
    else:
        kernel = functools.partial(_bn_add_relu_kernel, inv_m=1.0 / m)
        args = (y, s, ss, gamma, beta, residual)
        in_specs = [row_spec, chan_spec, chan_spec, chan_spec, chan_spec, row_spec]
        res_bytes = m * cout * residual.dtype.itemsize

    out = pl.pallas_call(
        kernel,
        grid=grid,
        in_specs=in_specs,
        out_specs=row_spec,
        out_shape=jax.ShapeDtypeStruct((m, cout), out_dtype),
        compiler_params=pltpu.CompilerParams(
            dimension_semantics=("parallel",),    # independent rows -> megacore
            vmem_limit_bytes=VMEM_LIMIT),
        cost_estimate=pl.CostEstimate(
            flops=4 * m * cout,
            transcendentals=cout,
            bytes_accessed=m * cout * 4 + res_bytes + m * cout * 2),
    )(*args)
    return out


def avgpool_linear(x_nsc, w_mat, bias):
    n = x_nsc.shape[0]
    num_classes = w_mat.shape[1]
    vmem = pl.BlockSpec(memory_space=pltpu.MemorySpace.VMEM)
    return pl.pallas_call(
        _avgpool_linear_kernel,
        out_shape=jax.ShapeDtypeStruct((n, num_classes), jnp.float32),
        in_specs=[vmem, vmem, vmem],
        out_specs=vmem,
        compiler_params=pltpu.CompilerParams(vmem_limit_bytes=VMEM_LIMIT),
    )(x_nsc, w_mat, bias)


# ----------------------------------------------------------------------------
# Plain-JAX glue: im2col, weight reshaping, shortcut, parameter init
# ----------------------------------------------------------------------------
def _im2col_3x3(x, stride):
    """x: (N,H,W,C) NHWC -> ((N*Ho*Wo, 9*C) patches, (N, Ho, Wo)). padding=1."""
    n, h, w, c = x.shape
    assert stride in (1, 2)
    if stride == 2:
        assert h % 2 == 0 and w % 2 == 0, "option-A shortcut assumes even H, W"
    xp = jnp.pad(x, ((0, 0), (1, 1), (1, 1), (0, 0)))
    ho = (h - 1) // stride + 1
    wo = (w - 1) // stride + 1
    cols = []
    for dh in range(3):
        for dw in range(3):
            cols.append(xp[:,
                           dh:dh + (ho - 1) * stride + 1:stride,
                           dw:dw + (wo - 1) * stride + 1:stride, :])
    patches = jnp.stack(cols, axis=3)                 # (N, Ho, Wo, 9, C)
    return patches.reshape(n * ho * wo, 9 * c), (n, ho, wo)


def _conv_w_to_mat(w):
    """PyTorch conv weight (Cout, Cin, 3, 3) -> bf16 matmul weight (9*Cin, Cout)."""
    cout, cin = w.shape[0], w.shape[1]
    return jnp.transpose(w, (2, 3, 1, 0)).reshape(9 * cin, cout).astype(jnp.bfloat16)


def _basic_block(x, blk, stride):
    """Option-A BasicBlock: relu(bn1(conv1(x))) -> bn2(conv2(.)) + shortcut -> relu."""
    n, h, w, cin = x.shape
    planes = blk["conv1_w"].shape[0]

    p1, (n, ho, wo) = _im2col_3x3(x, stride)
    y = conv_bn_act(p1, _conv_w_to_mat(blk["conv1_w"]), blk["bn1_g"], blk["bn1_b"],
                    relu=True)
    y = y.reshape(n, ho, wo, planes)

    p2, _ = _im2col_3x3(y, 1)

    if stride != 1 or cin != planes:
        # option 'A': strided subsample + zero-pad channels (cheap XLA ops)
        sc = x[:, ::2, ::2, :]
        pad = planes // 4
        sc = jnp.pad(sc, ((0, 0), (0, 0), (0, 0), (pad, pad)))
    else:
        sc = x
    residual = sc.reshape(n * ho * wo, planes)

    out = conv_bn_act(p2, _conv_w_to_mat(blk["conv2_w"]),
                      blk["bn2_g"], blk["bn2_b"], residual=residual)
    return out.reshape(n, ho, wo, planes)


def init_params(key, num_blocks=(1, 1, 1), num_classes=10):
    def nk():
        nonlocal key
        key, sub = jax.random.split(key)
        return sub

    def kaiming(shape, fan_in):
        return jax.random.normal(nk(), shape, dtype=jnp.float32) * jnp.sqrt(2.0 / fan_in)

    params = {
        "conv1_w": kaiming((16, 3, 3, 3), 3 * 9),
        "bn1_g": jnp.ones((1, 16), jnp.float32),
        "bn1_b": jnp.zeros((1, 16), jnp.float32),
    }
    in_planes = 16
    layers, strides_struct = [], []
    for planes, nb, stride0 in zip((16, 32, 64), num_blocks, (1, 2, 2)):
        blocks, bstrides = [], []
        for s in [stride0] + [1] * (nb - 1):
            blocks.append({
                "conv1_w": kaiming((planes, in_planes, 3, 3), in_planes * 9),
                "bn1_g": jnp.ones((1, planes), jnp.float32),
                "bn1_b": jnp.zeros((1, planes), jnp.float32),
                "conv2_w": kaiming((planes, planes, 3, 3), planes * 9),
                "bn2_g": jnp.ones((1, planes), jnp.float32),
                "bn2_b": jnp.zeros((1, planes), jnp.float32),
            })
            bstrides.append(s)
            in_planes = planes
        layers.append(blocks)
        strides_struct.append(tuple(bstrides))
    params["layers"] = layers
    params["strides"] = tuple(strides_struct)
    # Linear: kaiming weight, default uniform bias (deterministic via PRNG).
    params["fc_w"] = kaiming((num_classes, 64), 64).T          # stored (64, classes)
    bound = 1.0 / jnp.sqrt(64.0)
    params["fc_b"] = jax.random.uniform(nk(), (1, num_classes), jnp.float32,
                                        -bound, bound)
    return params


def resnet_forward(x_nchw, params):
    """x_nchw: (N, 3, H, W) float32 -> logits (N, num_classes)."""
    # NHWC, bf16 activations for the MXU (BN math stays in f32 inside kernels).
    x = jnp.transpose(x_nchw, (0, 2, 3, 1)).astype(jnp.bfloat16)
    p, (n, ho, wo) = _im2col_3x3(x, 1)
    y = conv_bn_act(p, _conv_w_to_mat(params["conv1_w"]),
                    params["bn1_g"], params["bn1_b"], relu=True)
    y = y.reshape(n, ho, wo, 16)

    for layer_blocks, layer_strides in zip(params["layers"], params["strides"]):
        for blk, stride in zip(layer_blocks, layer_strides):
            y = _basic_block(y, blk, stride)

    n, h, w, c = y.shape
    # F.avg_pool2d(out, out.size()[3]) == global average pool (H == W here)
    logits = avgpool_linear(y.reshape(n, h * w, c), params["fc_w"], params["fc_b"])
    return logits


if __name__ == "__main__":
    key = jax.random.PRNGKey(0)
    pkey, xkey = jax.random.split(key)
    params = init_params(pkey, num_blocks=(1, 1, 1), num_classes=10)
    x = jax.random.normal(xkey, (2, 3, 16, 16), dtype=jnp.float32)  # NCHW like PyTorch
    logits = resnet_forward(x, params)
    jax.block_until_ready(logits)
    assert logits.shape == (2, 10) and bool(jnp.all(jnp.isfinite(logits)))
    print("KERNEL_OK")
</pallas_src>

<mosaic_0001>
module attributes {stable_mosaic.version = 11 : i64} {
  func.func @_conv_stats_kernel(%arg0: i32, %arg1: memref<512x27xbf16, #tpu.memory_space<vmem>>, %arg2: memref<27x16xbf16, #tpu.memory_space<vmem>>, %arg3: memref<512x16xf32, #tpu.memory_space<vmem>>, %arg4: memref<1x16xf32, #tpu.memory_space<vmem>>, %arg5: memref<1x16xf32, #tpu.memory_space<vmem>>) attributes {dimension_semantics = [#tpu.dimension_semantics<arbitrary>], iteration_bounds = array<i64: 1>, scalar_prefetch = 0 : i64, scratch_operands = 0 : i64, tpu.core_type = #tpu.core_type<tc>, window_params = [{transform_indices = @transform_0, window_bounds = array<i64: 512, 27>}, {pipeline_mode = #tpu.pipeline_mode<synchronous>, transform_indices = @transform_1, window_bounds = array<i64: 27, 16>}, {transform_indices = @transform_2, window_bounds = array<i64: 512, 16>}, {pipeline_mode = #tpu.pipeline_mode<synchronous>, transform_indices = @transform_3, window_bounds = array<i64: 1, 16>}, {pipeline_mode = #tpu.pipeline_mode<synchronous>, transform_indices = @transform_4, window_bounds = array<i64: 1, 16>}]} {
    %c0 = arith.constant 0 : index
    %c0_0 = arith.constant 0 : index
    %0 = vector.load %arg1[%c0, %c0_0] : memref<512x27xbf16, #tpu.memory_space<vmem>>, vector<512x27xbf16>
    %c0_1 = arith.constant 0 : index
    %c0_2 = arith.constant 0 : index
    %1 = vector.load %arg2[%c0_1, %c0_2] : memref<27x16xbf16, #tpu.memory_space<vmem>>, vector<27x16xbf16>
    %cst = arith.constant dense<0.000000e+00> : vector<512x16xf32>
    %2 = tpu.matmul %0, %1, %cst {dimension_numbers = #tpu.dot_dimension_numbers<[1], [0], [0], [1], [0, 0, 1, 1], [], []>} : vector<512x27xbf16>, vector<27x16xbf16>, vector<512x16xf32> -> vector<512x16xf32>
    %c0_3 = arith.constant 0 : index
    %c0_4 = arith.constant 0 : index
    %3 = vector.load %arg3[%c0_3, %c0_4] : memref<512x16xf32, #tpu.memory_space<vmem>>, vector<512x16xf32>
    tpu.vector_store %arg3[%c0_3, %c0_4], %2 {strides = array<i32>} : memref<512x16xf32, #tpu.memory_space<vmem>>, vector<512x16xf32>,
    %c0_i32 = arith.constant 0 : i32
    %4 = arith.cmpi eq, %arg0, %c0_i32 : i32
    %5 = arith.extui %4 : i1 to i32
    %c0_i32_5 = arith.constant 0 : i32
    %6 = arith.cmpi ne, %5, %c0_i32_5 : i32
    scf.if %6 {
      %cst_16 = arith.constant 0.000000e+00 : f32
      %18 = vector.broadcast %cst_16 : f32 to vector<1x16xf32>
      %c0_17 = arith.constant 0 : index
      %c0_18 = arith.constant 0 : index
      %19 = vector.load %arg4[%c0_17, %c0_18] : memref<1x16xf32, #tpu.memory_space<vmem>>, vector<1x16xf32>
      tpu.vector_store %arg4[%c0_17, %c0_18], %18 {strides = array<i32>} : memref<1x16xf32, #tpu.memory_space<vmem>>, vector<1x16xf32>,
      %cst_19 = arith.constant 0.000000e+00 : f32
      %20 = vector.broadcast %cst_19 : f32 to vector<1x16xf32>
      %c0_20 = arith.constant 0 : index
      %c0_21 = arith.constant 0 : index
      %21 = vector.load %arg5[%c0_20, %c0_21] : memref<1x16xf32, #tpu.memory_space<vmem>>, vector<1x16xf32>
      tpu.vector_store %arg5[%c0_20, %c0_21], %20 {strides = array<i32>} : memref<1x16xf32, #tpu.memory_space<vmem>>, vector<1x16xf32>,
    } else {
    }
    %c0_6 = arith.constant 0 : index
    %c0_7 = arith.constant 0 : index
    %7 = vector.load %arg4[%c0_6, %c0_7] : memref<1x16xf32, #tpu.memory_space<vmem>>, vector<1x16xf32>
    %cst_8 = arith.constant dense<0.000000e+00> : vector<16xf32>
    %8 = vector.multi_reduction <add>, %2, %cst_8 [0] : vector<512x16xf32> to vector<16xf32>
    %9 = vector.shape_cast %8 : vector<16xf32> to vector<1x16xf32>
    %10 = arith.addf %7, %9 : vector<1x16xf32>
    %c0_9 = arith.constant 0 : index
    %c0_10 = arith.constant 0 : index
    %11 = vector.load %arg4[%c0_9, %c0_10] : memref<1x16xf32, #tpu.memory_space<vmem>>, vector<1x16xf32>
    tpu.vector_store %arg4[%c0_9, %c0_10], %10 {strides = array<i32>} : memref<1x16xf32, #tpu.memory_space<vmem>>, vector<1x16xf32>,
    %c0_11 = arith.constant 0 : index
    %c0_12 = arith.constant 0 : index
    %12 = vector.load %arg5[%c0_11, %c0_12] : memref<1x16xf32, #tpu.memory_space<vmem>>, vector<1x16xf32>
    %13 = arith.mulf %2, %2 : vector<512x16xf32>
    %cst_13 = arith.constant dense<0.000000e+00> : vector<16xf32>
    %14 = vector.multi_reduction <add>, %13, %cst_13 [0] : vector<512x16xf32> to vector<16xf32>
    %15 = vector.shape_cast %14 : vector<16xf32> to vector<1x16xf32>
    %16 = arith.addf %12, %15 : vector<1x16xf32>
    %c0_14 = arith.constant 0 : index
    %c0_15 = arith.constant 0 : index
    %17 = vector.load %arg5[%c0_14, %c0_15] : memref<1x16xf32, #tpu.memory_space<vmem>>, vector<1x16xf32>
    tpu.vector_store %arg5[%c0_14, %c0_15], %16 {strides = array<i32>} : memref<1x16xf32, #tpu.memory_space<vmem>>, vector<1x16xf32>,
    return
  }
  func.func @transform_0(%arg0: i32) -> (i32, i32) {
    %c0_i32 = arith.constant 0 : i32
    %c0_i32_0 = arith.constant 0 : i32
    return %arg0, %c0_i32 : i32, i32
  }
  func.func @transform_1(%arg0: i32) -> (i32, i32) {
    %c0_i32 = arith.constant 0 : i32
    %c0_i32_0 = arith.constant 0 : i32
    %c0_i32_1 = arith.constant 0 : i32
    return %c0_i32, %c0_i32_0 : i32, i32
  }
  func.func @transform_2(%arg0: i32) -> (i32, i32) {
    %c0_i32 = arith.constant 0 : i32
    %c0_i32_0 = arith.constant 0 : i32
    return %arg0, %c0_i32 : i32, i32
  }
  func.func @transform_3(%arg0: i32) -> (i32, i32) {
    %c0_i32 = arith.constant 0 : i32
    %c0_i32_0 = arith.constant 0 : i32
    %c0_i32_1 = arith.constant 0 : i32
    return %c0_i32, %c0_i32_0 : i32, i32
  }
  func.func @transform_4(%arg0: i32) -> (i32, i32) {
    %c0_i32 = arith.constant 0 : i32
    %c0_i32_0 = arith.constant 0 : i32
    %c0_i32_1 = arith.constant 0 : i32
    return %c0_i32, %c0_i32_0 : i32, i32
  }
}

</mosaic_0001>

<bundles_post_ra>
// kernel: tpu_custom_call.1
= control target key start
LH: loop header
LB: loop body
LE: loop exit
PB: predicated region body
PF: predicated region fallthrough
CT: control target
= control target key end

     0   :  { %10 = vsyncpa [#allocation3], 0  ;;  %vm353_vm0 = vcmask 1044480   ;;  %vm354_vm1 = vcmask 1045504   ;;  %v1238_v3 = vmov 65535   ;;  %s2092_s0 = inlined_call_operand.vmem [shape: bf16[512,27], index: 0, kind: input, shape index: {}]   ;;  %s2093_s1 = inlined_call_operand.vmem [shape: bf16[27,16], index: 1, kind: input, shape index: {}]   ;;  %s2094_s2 = inlined_call_operand.vmem [shape: f32[512,16], index: 2, kind: output, shape index: {0}]   ;;  %s2095_s3 = inlined_call_operand.hbm [shape: f32[1,16], index: 3, kind: output, shape index: {1}]   ;;  %s2096_s4 = inlined_call_operand.hbm [shape: f32[1,16], index: 4, kind: output, shape index: {2}]  }
   0x1   :  { %v1108_v0 = vld [vmem:[%s2093_s1 + $0x8] sm:$0xf]  ;;  %v1175_v1 = vld [vmem:[%s2093_s1 + $0x8] sm:$0x30]  ;;  %v355_v4 = vsel %vm353_vm0, 4294967295, %v1238_v3 }
   0x2   :  { %v1109_v2 = vor.u32 %v1175_v1, %v1108_v0 }
   0x3   :  { %11 = vsyncpa [#allocation5], 0  ;;  %v356_v5 = vsel %vm354_vm1, %v355_v4, 0  ;;  %v1174_v7 = vld [vmem:[%s2093_s1] sm:$0xff]  ;;  %vm256_vm2 = vcmask 220160   ;;  %v1143_v10 = vld [vmem:[%s2092_s0 + $0x8] sm:$0xff] }
   0x4   :  { %v358_v6 = vand.u32 %v1109_v2, %v356_v5  ;;  %v1142_v8 = vld [vmem:[%s2092_s0] sm:$0xff]  ;;  %v1151_v11 = vld [vmem:[%s2092_s0 + $0x48] sm:$0xff]  ;;  %v1144_v13 = vld [vmem:[%s2092_s0 + $0x10] sm:$0xff]  ;;  %vm529_vm3 = vcmask 130048   ;;  %vm598_vm4 = vcmask 122880   ;;  %s947_s23 = sshll.u32 %s2095_s3, 4  ;;  %s948_s23 = int_to_ptr.hbm [resolvable:$true] %s947_s23 }
   0x5   :  { %v1150_v9 = vld [vmem:[%s2092_s0 + $0x40] sm:$0xff]  ;;  %v1152_v14 = vld [vmem:[%s2092_s0 + $0x50] sm:$0xff]  ;;  %v1159_v15 = vld [vmem:[%s2092_s0 + $0x88] sm:$0xff]  ;;  %s1241_s24 = smov [#allocation4]   ;;  %s958_s27 = sshll.u32 %s2096_s4, 4  ;;  %s959_s27 = int_to_ptr.hbm [resolvable:$true] %s958_s27 }
   0x6   :  { %366 = vmatpush.bf16.msra.mxu0 %v358_v6  ;;  %1176 = vmatpush.bf16.msra.mxu1 %v358_v6  ;;  %v1158_v12 = vld [vmem:[%s2092_s0 + $0x80] sm:$0xff]  ;;  %v1145_v16 = vld [vmem:[%s2092_s0 + $0x18] sm:$0xff]  ;;  %v1160_v18 = vld [vmem:[%s2092_s0 + $0x90] sm:$0xff]  ;;  %s956_s1 = sshll.u32 %s1241_s24, 4  ;;  %s957_s1 = int_to_ptr.vmem [resolvable:$true] %s956_s1 }
   0x7   :  { %1177 = vmatpush.bf16.msra.mxu2 %v358_v6  ;;  %1178 = vmatpush.bf16.msra.mxu3 %v358_v6  ;;  %v1153_v17 = vld [vmem:[%s2092_s0 + $0x58] sm:$0xff]  ;;  %v1166_v19 = vld [vmem:[%s2092_s0 + $0xc0] sm:$0xff]  ;;  %v1167_v23 = vld [vmem:[%s2092_s0 + $0xc8] sm:$0xff] }
   0x8   :  { %v1146_v20 = vld [vmem:[%s2092_s0 + $0x20] sm:$0xff]  ;;  %v1161_v22 = vld [vmem:[%s2092_s0 + $0x98] sm:$0xff]  ;;  %v1147_v24 = vld [vmem:[%s2092_s0 + $0x28] sm:$0xff] }
   0x9   :  { %v1154_v21 = vld [vmem:[%s2092_s0 + $0x60] sm:$0xff]  ;;  %v1155_v25 = vld [vmem:[%s2092_s0 + $0x68] sm:$0xff]  ;;  %v1168_v27 = vld [vmem:[%s2092_s0 + $0xd0] sm:$0xff] }
   0xa   :  { %367 = vmatpush.bf16.msra.mxu0 %v1174_v7  ;;  %1179 = vmatpush.bf16.msra.mxu1 %v1174_v7  ;;  %v1162_v26 = vld [vmem:[%s2092_s0 + $0xa0] sm:$0xff]  ;;  %v1148_v28 = vld [vmem:[%s2092_s0 + $0x30] sm:$0xff]  ;;  %v1163_v30 = vld [vmem:[%s2092_s0 + $0xa8] sm:$0xff] }
   0xb   :  { %1180 = vmatpush.bf16.msra.mxu2 %v1174_v7  ;;  %1181 = vmatpush.bf16.msra.mxu3 %v1174_v7  ;;  %v1156_v29 = vld [vmem:[%s2092_s0 + $0x70] sm:$0xff]  ;;  %v1169_v31 = vld [vmem:[%s2092_s0 + $0xd8] sm:$0xff]  ;;  %v1170_v35 = vld [vmem:[%s2092_s0 + $0xe0] sm:$0xff] }
   0xc   :  { %v1149_v32 = vld [vmem:[%s2092_s0 + $0x38] sm:$0xff]  ;;  %v1164_v34 = vld [vmem:[%s2092_s0 + $0xb0] sm:$0xff]  ;;  %v1171_v39 = vld [vmem:[%s2092_s0 + $0xe8] sm:$0xff] }
   0xd   :  { %1110 = vmatmul.msk.bf16.vlgmr.msra.gmra.mxu0 %vm256_vm2, %v1142_v8  ;;  %1118 = vmatmul.msk.bf16.vlgmr.msra.gmra.mxu1 %vm256_vm2, %v1150_v9  ;;  %v1157_v33 = vld [vmem:[%s2092_s0 + $0x78] sm:$0xff]  ;;  %v1172_v56 = vld [vmem:[%s2092_s0 + $0xf0] sm:$0xff] }
   0xe   :  { %1126 = vmatmul.msk.bf16.vlgmr.msra.gmra.mxu2 %vm256_vm2, %v1158_v12  ;;  %1134 = vmatmul.msk.bf16.vlgmr.msra.gmra.mxu3 %vm256_vm2, %v1166_v19  ;;  %v1165_v38 = vld [vmem:[%s2092_s0 + $0xb8] sm:$0xff] }
   0xf   :  { %v1173_v9 = vld [vmem:[%s2092_s0 + $0xf8] sm:$0xff] }
  0x1d   :  { %1111 = vmatmul.msk.bf16.gmra.mxu0 %vm256_vm2, %v1143_v10  ;;  %1119 = vmatmul.msk.bf16.gmra.mxu1 %vm256_vm2, %v1151_v11 }
  0x1e   :  { %1127 = vmatmul.msk.bf16.gmra.mxu2 %vm256_vm2, %v1159_v15  ;;  %1135 = vmatmul.msk.bf16.gmra.mxu3 %vm256_vm2, %v1167_v23 }
  0x2d   :  { %1112 = vmatmul.msk.bf16.gmra.mxu0 %vm256_vm2, %v1144_v13  ;;  %1120 = vmatmul.msk.bf16.gmra.mxu1 %vm256_vm2, %v1152_v14 }
  0x2e   :  { %1128 = vmatmul.msk.bf16.gmra.mxu2 %vm256_vm2, %v1160_v18  ;;  %1136 = vmatmul.msk.bf16.gmra.mxu3 %vm256_vm2, %v1168_v27 }
  0x3d   :  { %1113 = vmatmul.msk.bf16.gmra.mxu0 %vm256_vm2, %v1145_v16  ;;  %1121 = vmatmul.msk.bf16.gmra.mxu1 %vm256_vm2, %v1153_v17 }
  0x3e   :  { %1129 = vmatmul.msk.bf16.gmra.mxu2 %vm256_vm2, %v1161_v22  ;;  %1137 = vmatmul.msk.bf16.gmra.mxu3 %vm256_vm2, %v1169_v31 }
  0x4d   :  { %1114 = vmatmul.msk.bf16.gmra.mxu0 %vm256_vm2, %v1146_v20  ;;  %1122 = vmatmul.msk.bf16.gmra.mxu1 %vm256_vm2, %v1154_v21 }
  0x4e   :  { %1130 = vmatmul.msk.bf16.gmra.mxu2 %vm256_vm2, %v1162_v26  ;;  %1138 = vmatmul.msk.bf16.gmra.mxu3 %vm256_vm2, %v1170_v35 }
  0x5d   :  { %1115 = vmatmul.msk.bf16.gmra.mxu0 %vm256_vm2, %v1147_v24  ;;  %1123 = vmatmul.msk.bf16.gmra.mxu1 %vm256_vm2, %v1155_v25 }
  0x5e   :  { %1131 = vmatmul.msk.bf16.gmra.mxu2 %vm256_vm2, %v1163_v30  ;;  %1139 = vmatmul.msk.bf16.gmra.mxu3 %vm256_vm2, %v1171_v39 }
  0x6d   :  { %1116 = vmatmul.msk.bf16.gmra.mxu0 %vm256_vm2, %v1148_v28  ;;  %1124 = vmatmul.msk.bf16.gmra.mxu1 %vm256_vm2, %v1156_v29 }
  0x6e   :  { %1132 = vmatmul.msk.bf16.gmra.mxu2 %vm256_vm2, %v1164_v34  ;;  %1140 = vmatmul.msk.bf16.gmra.mxu3 %vm256_vm2, %v1172_v56 }
  0x7d   :  { %1117 = vmatmul.msk.bf16.gmra.mxu0 %vm256_vm2, %v1149_v32  ;;  %1125 = vmatmul.msk.bf16.gmra.mxu1 %vm256_vm2, %v1157_v33 }
  0x7e   :  { %1133 = vmatmul.msk.bf16.gmra.mxu2 %vm256_vm2, %v1165_v38  ;;  %1141 = vmatmul.msk.bf16.gmra.mxu3 %vm256_vm2, %v1173_v9 }
  0x8a   :  { %v369_v36 = vpop.f32.mrf.mxu0  ;;  %v1388_v37 = vpop.f32.mrf.mxu1 }
  0x8b   :  { %530 = vst.msk [vmem:[%s2094_s2] sm:$0xff] %vm529_vm3, %v369_v36  ;;  %v739_v40 = vmul.f32 %v369_v36, %v369_v36  ;;  %v602_v43 = vsel %vm529_vm3, %v369_v36, 0.0 }
  0x8c   :  { %546 = vst.msk [vmem:[%s2094_s2 + $0x80] sm:$0xff] %vm529_vm3, %v1388_v37 }
  0x8d   :  { %v803_v47 = vsel %vm529_vm3, %v739_v40, 0.0 }
  0x91   :  { %v1446_v62 = vpop.f32.mrf.mxu2  ;;  %v1531_v20 = vpop.f32.mrf.mxu3 }
  0x92   :  { %v371_v41 = vpop.f32.mrf.mxu0  ;;  %v1407_v42 = vpop.f32.mrf.mxu1  ;;  %562 = vst.msk [vmem:[%s2094_s2 + $0x100] sm:$0xff] %vm529_vm3, %v1446_v62 }
  0x93   :  { %531 = vst.msk [vmem:[%s2094_s2 + $0x8] sm:$0xff] %vm529_vm3, %v371_v41  ;;  %v603_v44 = vsel %vm529_vm3, %v371_v41, 0.0  ;;  %v740_v45 = vmul.f32 %v371_v41, %v371_v41 }
  0x94   :  { %v604_v46 = vadd.f32 %v603_v44, %v602_v43  ;;  %547 = vst.msk [vmem:[%s2094_s2 + $0x88] sm:$0xff] %vm529_vm3, %v1407_v42 }
  0x95   :  { %v804_v48 = vsel %vm529_vm3, %v740_v45, 0.0  ;;  %578 = vst.msk [vmem:[%s2094_s2 + $0x180] sm:$0xff] %vm529_vm3, %v1531_v20 }
  0x96   :  { %v805_v49 = vadd.f32 %v804_v48, %v803_v47 }
  0x99   :  { %v1466_v6 = vpop.f32.mrf.mxu2  ;;  %v1556_v24 = vpop.f32.mrf.mxu3 }
  0x9a   :  { %v374_v50 = vpop.f32.mrf.mxu0  ;;  %v1422_v51 = vpop.f32.mrf.mxu1  ;;  %563 = vst.msk [vmem:[%s2094_s2 + $0x108] sm:$0xff] %vm529_vm3, %v1466_v6 }
  0x9b   :  { %532 = vst.msk [vmem:[%s2094_s2 + $0x10] sm:$0xff] %vm529_vm3, %v374_v50  ;;  %v605_v52 = vsel %vm529_vm3, %v374_v50, 0.0  ;;  %v741_v53 = vmul.f32 %v374_v50, %v374_v50 }
  0x9c   :  { %v606_v54 = vadd.f32 %v605_v52, %v604_v46  ;;  %548 = vst.msk [vmem:[%s2094_s2 + $0x90] sm:$0xff] %vm529_vm3, %v1422_v51 }
  0x9d   :  { %v806_v55 = vsel %vm529_vm3, %v741_v53, 0.0  ;;  %579 = vst.msk [vmem:[%s2094_s2 + $0x188] sm:$0xff] %vm529_vm3, %v1556_v24 }
  0x9e   :  { %v807_v57 = vadd.f32 %v806_v55, %v805_v49 }
  0xa1   :  { %v1493_v13 = vpop.f32.mrf.mxu2  ;;  %v1581_v28 = vpop.f32.mrf.mxu3 }
  0xa2   :  { %v376_v58 = vpop.f32.mrf.mxu0  ;;  %v1439_v59 = vpop.f32.mrf.mxu1  ;;  %564 = vst.msk [vmem:[%s2094_s2 + $0x110] sm:$0xff] %vm529_vm3, %v1493_v13 }
  0xa3   :  { %533 = vst.msk [vmem:[%s2094_s2 + $0x18] sm:$0xff] %vm529_vm3, %v376_v58  ;;  %v607_v60 = vsel %vm529_vm3, %v376_v58, 0.0  ;;  %v742_v61 = vmul.f32 %v376_v58, %v376_v58 }
  0xa4   :  { %v608_v63 = vadd.f32 %v607_v60, %v606_v54  ;;  %549 = vst.msk [vmem:[%s2094_s2 + $0x98] sm:$0xff] %vm529_vm3, %v1439_v59 }
  0xa5   :  { %v808_v0 = vsel %vm529_vm3, %v742_v61, 0.0  ;;  %580 = vst.msk [vmem:[%s2094_s2 + $0x190] sm:$0xff] %vm529_vm3, %v1581_v28 }
  0xa6   :  { %v809_v1 = vadd.f32 %v808_v0, %v807_v57 }
  0xa9   :  { %v1511_v16 = vpop.f32.mrf.mxu2  ;;  %v1606_v32 = vpop.f32.mrf.mxu3 }
  0xaa   :  { %v379_v2 = vpop.f32.mrf.mxu0  ;;  %v1459_v3 = vpop.f32.mrf.mxu1  ;;  %565 = vst.msk [vmem:[%s2094_s2 + $0x118] sm:$0xff] %vm529_vm3, %v1511_v16 }
  0xab   :  { %534 = vst.msk [vmem:[%s2094_s2 + $0x20] sm:$0xff] %vm529_vm3, %v379_v2  ;;  %v609_v4 = vsel %vm529_vm3, %v379_v2, 0.0  ;;  %v743_v5 = vmul.f32 %v379_v2, %v379_v2 }
  0xac   :  { %v1468_v7 = vadd.f32 %v609_v4, %v608_v63  ;;  %550 = vst.msk [vmem:[%s2094_s2 + $0xa0] sm:$0xff] %vm529_vm3, %v1459_v3 }
  0xad   :  { %v810_v8 = vsel %vm529_vm3, %v743_v5, 0.0  ;;  %581 = vst.msk [vmem:[%s2094_s2 + $0x198] sm:$0xff] %vm529_vm3, %v1606_v32 }
  0xae   :  { %v1484_v10 = vadd.f32 %v810_v8, %v809_v1 }
  0xb1   :  { %v1529_v19 = vpop.f32.mrf.mxu2  ;;  %v1631_v36 = vpop.f32.mrf.mxu3 }
  0xb2   :  { %v381_v11 = vpop.f32.mrf.mxu0  ;;  %v1487_v12 = vpop.f32.mrf.mxu1  ;;  %566 = vst.msk [vmem:[%s2094_s2 + $0x120] sm:$0xff] %vm529_vm3, %v1529_v19 }
  0xb3   :  { %535 = vst.msk [vmem:[%s2094_s2 + $0x28] sm:$0xff] %vm529_vm3, %v381_v11  ;;  %v744_v40 = vmul.f32 %v381_v11, %v381_v11  ;;  %v611_v44 = vsel %vm529_vm3, %v381_v11, 0.0 }
  0xb4   :  { %551 = vst.msk [vmem:[%s2094_s2 + $0xa8] sm:$0xff] %vm529_vm3, %v1487_v12  ;;  %v612_v49 = vadd.f32 %v611_v44, %v1468_v7 }
  0xb5   :  { %582 = vst.msk [vmem:[%s2094_s2 + $0x1a0] sm:$0xff] %vm529_vm3, %v1631_v36  ;;  %v812_v46 = vsel %vm529_vm3, %v744_v40, 0.0 }
  0xb6   :  { %v813_v54 = vadd.f32 %v812_v46, %v1484_v10 }
  0xb9   :  { %v1554_v23 = vpop.f32.mrf.mxu2  ;;  %v1656_v43 = vpop.f32.mrf.mxu3 }
  0xba   :  { %v384_v14 = vpop.f32.mrf.mxu0  ;;  %v1505_v15 = vpop.f32.mrf.mxu1  ;;  %567 = vst.msk [vmem:[%s2094_s2 + $0x128] sm:$0xff] %vm529_vm3, %v1554_v23 }
  0xbb   :  { %536 = vst.msk [vmem:[%s2094_s2 + $0x30] sm:$0xff] %vm529_vm3, %v384_v14  ;;  %v745_v45 = vmul.f32 %v384_v14, %v384_v14  ;;  %v613_v47 = vsel %vm529_vm3, %v384_v14, 0.0 }
  0xbc   :  { %552 = vst.msk [vmem:[%s2094_s2 + $0xb0] sm:$0xff] %vm529_vm3, %v1505_v15  ;;  %v614_v55 = vadd.f32 %v613_v47, %v612_v49 }
  0xbd   :  { %583 = vst.msk [vmem:[%s2094_s2 + $0x1a8] sm:$0xff] %vm529_vm3, %v1656_v43  ;;  %v814_v50 = vsel %vm529_vm3, %v745_v45, 0.0 }
  0xbe   :  { %v815_v1 = vadd.f32 %v814_v50, %v813_v54 }
  0xc1   :  { %v1579_v27 = vpop.f32.mrf.mxu2  ;;  %v1690_v0 = vpop.f32.mrf.mxu3 }
  0xc2   :  { %v386_v17 = vpop.f32.mrf.mxu0  ;;  %v1523_v18 = vpop.f32.mrf.mxu1  ;;  %568 = vst.msk [vmem:[%s2094_s2 + $0x130] sm:$0xff] %vm529_vm3, %v1579_v27 }
  0xc3   :  { %537 = vst.msk [vmem:[%s2094_s2 + $0x38] sm:$0xff] %vm529_vm3, %v386_v17  ;;  %v746_v48 = vmul.f32 %v386_v17, %v386_v17  ;;  %v615_v52 = vsel %vm529_vm3, %v386_v17, 0.0 }
  0xc4   :  { %553 = vst.msk [vmem:[%s2094_s2 + $0xb8] sm:$0xff] %vm529_vm3, %v1523_v18  ;;  %v616_v2 = vadd.f32 %v615_v52, %v614_v55 }
  0xc5   :  { %v816_v58 = vsel %vm529_vm3, %v746_v48, 0.0  ;;  %584 = vst.msk [vmem:[%s2094_s2 + $0x1b0] sm:$0xff] %vm529_vm3, %v1690_v0 }
  0xc6   :  { %v817_v8 = vadd.f32 %v816_v58, %v815_v1 }
  0xc9   :  { %v1604_v31 = vpop.f32.mrf.mxu2 }
  0xca   :  { %v389_v21 = vpop.f32.mrf.mxu0  ;;  %v1548_v22 = vpop.f32.mrf.mxu1  ;;  %569 = vst.msk [vmem:[%s2094_s2 + $0x138] sm:$0xff] %vm529_vm3, %v1604_v31 }
  0xcb   :  { %538 = vst.msk [vmem:[%s2094_s2 + $0x40] sm:$0xff] %vm529_vm3, %v389_v21  ;;  %v747_v53 = vmul.f32 %v389_v21, %v389_v21  ;;  %v617_v60 = vsel %vm529_vm3, %v389_v21, 0.0 }
  0xcc   :  { %554 = vst.msk [vmem:[%s2094_s2 + $0xc0] sm:$0xff] %vm529_vm3, %v1548_v22  ;;  %v618_v9 = vadd.f32 %v617_v60, %v616_v2 }
  0xcd   :  { %v818_v4 = vsel %vm529_vm3, %v747_v53, 0.0  ;;  %v1723_v53 = vpop.f32.mrf.mxu3 }
  0xce   :  { %v819_v17 = vadd.f32 %v818_v4, %v817_v8  ;;  %585 = vst.msk [vmem:[%s2094_s2 + $0x1b8] sm:$0xff] %vm529_vm3, %v1723_v53 }
  0xd1   :  { %v1629_v35 = vpop.f32.mrf.mxu2 }
  0xd2   :  { %v391_v25 = vpop.f32.mrf.mxu0  ;;  %v1573_v26 = vpop.f32.mrf.mxu1  ;;  %570 = vst.msk [vmem:[%s2094_s2 + $0x140] sm:$0xff] %vm529_vm3, %v1629_v35 }
  0xd3   :  { %539 = vst.msk [vmem:[%s2094_s2 + $0x48] sm:$0xff] %vm529_vm3, %v391_v25  ;;  %v748_v61 = vmul.f32 %v391_v25, %v391_v25  ;;  %v619_v5 = vsel %vm529_vm3, %v391_v25, 0.0 }
  0xd4   :  { %555 = vst.msk [vmem:[%s2094_s2 + $0xc8] sm:$0xff] %vm529_vm3, %v1573_v26  ;;  %v620_v21 = vadd.f32 %v619_v5, %v618_v9 }
  0xd5   :  { %v820_v10 = vsel %vm529_vm3, %v748_v61, 0.0 }
  0xd6   :  { %v821_v45 = vadd.f32 %v820_v10, %v819_v17 }
  0xd9   :  { %v1654_v41 = vpop.f32.mrf.mxu2 }
  0xda   :  { %v394_v29 = vpop.f32.mrf.mxu0  ;;  %v1598_v30 = vpop.f32.mrf.mxu1  ;;  %571 = vst.msk [vmem:[%s2094_s2 + $0x148] sm:$0xff] %vm529_vm3, %v1654_v41 }
  0xdb   :  { %540 = vst.msk [vmem:[%s2094_s2 + $0x50] sm:$0xff] %vm529_vm3, %v394_v29  ;;  %v749_v7 = vmul.f32 %v394_v29, %v394_v29  ;;  %v621_v11 = vsel %vm529_vm3, %v394_v29, 0.0 }
  0xdc   :  { %556 = vst.msk [vmem:[%s2094_s2 + $0xd0] sm:$0xff] %vm529_vm3, %v1598_v30  ;;  %v622_v46 = vadd.f32 %v621_v11, %v620_v21  ;;  %v755_v11 = vmul.f32 %v1388_v37, %v1388_v37 }
  0xdd   :  { %v822_v25 = vsel %vm529_vm3, %v749_v7, 0.0 }
  0xe1   :  { %v1688_v63 = vpop.f32.mrf.mxu2 }
  0xe2   :  { %v396_v33 = vpop.f32.mrf.mxu0  ;;  %v1623_v34 = vpop.f32.mrf.mxu1  ;;  %572 = vst.msk [vmem:[%s2094_s2 + $0x150] sm:$0xff] %vm529_vm3, %v1688_v63 }
  0xe3   :  { %541 = vst.msk [vmem:[%s2094_s2 + $0x58] sm:$0xff] %vm529_vm3, %v396_v33  ;;  %v750_v14 = vmul.f32 %v396_v33, %v396_v33  ;;  %v623_v40 = vsel %vm529_vm3, %v396_v33, 0.0  ;;  %v823_v33 = vadd.f32 %v822_v25, %v821_v45  ;;  %v1756_v25 = vpop.f32.mrf.mxu3  ;;  %v633_v45 = vsel %vm529_vm3, %v1388_v37, 0.0 }
  0xe4   :  { %557 = vst.msk [vmem:[%s2094_s2 + $0xd8] sm:$0xff] %vm529_vm3, %v1623_v34  ;;  %v624_v54 = vadd.f32 %v623_v40, %v622_v46  ;;  %v756_v46 = vmul.f32 %v1407_v42, %v1407_v42  ;;  %v834_v37 = vsel %vm529_vm3, %v755_v11, 0.0 }
  0xe5   :  { %v824_v49 = vsel %vm529_vm3, %v750_v14, 0.0  ;;  %586 = vst.msk [vmem:[%s2094_s2 + $0x1c0] sm:$0xff] %vm529_vm3, %v1756_v25 }
  0xe6   :  { %v825_v60 = vadd.f32 %v824_v49, %v823_v33  ;;  %v757_v33 = vmul.f32 %v1422_v51, %v1422_v51 }
  0xe9   :  { %v1721_v29 = vpop.f32.mrf.mxu2 }
  0xea   :  { %v399_v38 = vpop.f32.mrf.mxu0  ;;  %v1648_v39 = vpop.f32.mrf.mxu1  ;;  %573 = vst.msk [vmem:[%s2094_s2 + $0x158] sm:$0xff] %vm529_vm3, %v1721_v29 }
  0xeb   :  { %542 = vst.msk [vmem:[%s2094_s2 + $0x60] sm:$0xff] %vm529_vm3, %v399_v38  ;;  %v751_v44 = vmul.f32 %v399_v38, %v399_v38  ;;  %v625_v50 = vsel %vm529_vm3, %v399_v38, 0.0 }
  0xec   :  { %558 = vst.msk [vmem:[%s2094_s2 + $0xe0] sm:$0xff] %vm529_vm3, %v1648_v39  ;;  %v626_v61 = vadd.f32 %v625_v50, %v624_v54 }
  0xed   :  { %v826_v38 = vsel %vm529_vm3, %v751_v44, 0.0 }
  0xf1   :  { %v1754_v21 = vpop.f32.mrf.mxu2 }
  0xf2   :  { %v401_v56 = vpop.f32.mrf.mxu0  ;;  %v1680_v57 = vpop.f32.mrf.mxu1  ;;  %574 = vst.msk [vmem:[%s2094_s2 + $0x160] sm:$0xff] %vm529_vm3, %v1754_v21 }
  0xf3   :  { %543 = vst.msk [vmem:[%s2094_s2 + $0x68] sm:$0xff] %vm529_vm3, %v401_v56  ;;  %v752_v52 = vmul.f32 %v401_v56, %v401_v56  ;;  %v627_v55 = vsel %vm529_vm3, %v401_v56, 0.0  ;;  %v827_v56 = vadd.f32 %v826_v38, %v825_v60  ;;  %v758_v60 = vmul.f32 %v1439_v59, %v1439_v59 }
  0xf4   :  { %559 = vst.msk [vmem:[%s2094_s2 + $0xe8] sm:$0xff] %vm529_vm3, %v1680_v57  ;;  %v628_v4 = vadd.f32 %v627_v55, %v626_v61  ;;  %v836_v55 = vsel %vm529_vm3, %v756_v46, 0.0 }
  0xf5   :  { %v828_v1 = vsel %vm529_vm3, %v752_v52, 0.0  ;;  %v635_v52 = vsel %vm529_vm3, %v1407_v42, 0.0  ;;  %v639_v42 = vsel %vm529_vm3, %v1439_v59, 0.0  ;;  %v641_v59 = vsel %vm529_vm3, %v1459_v3, 0.0 }
  0xf6   :  { %v829_v7 = vadd.f32 %v828_v1, %v827_v56  ;;  %v759_v56 = vmul.f32 %v1459_v3, %v1459_v3 }
  0xfa   :  { %v404_v47 = vpop.f32.mrf.mxu0  ;;  %v1713_v48 = vpop.f32.mrf.mxu1 }
  0xfb   :  { %544 = vst.msk [vmem:[%s2094_s2 + $0x70] sm:$0xff] %vm529_vm3, %v404_v47  ;;  %v753_v58 = vmul.f32 %v404_v47, %v404_v47  ;;  %v629_v2 = vsel %vm529_vm3, %v404_v47, 0.0 }
  0xfc   :  { %560 = vst.msk [vmem:[%s2094_s2 + $0xf0] sm:$0xff] %vm529_vm3, %v1713_v48  ;;  %v630_v8 = vadd.f32 %v629_v2, %v628_v4  ;;  %v838_v2 = vsel %vm529_vm3, %v757_v33, 0.0  ;;  %v1793_v4 = vpop.f32.mrf.mxu2  ;;  %v763_v33 = vmul.f32 %v1548_v22, %v1548_v22 }
  0xfd   :  { %v830_v5 = vsel %vm529_vm3, %v753_v58, 0.0  ;;  %v637_v58 = vsel %vm529_vm3, %v1422_v51, 0.0  ;;  %575 = vst.msk [vmem:[%s2094_s2 + $0x168] sm:$0xff] %vm529_vm3, %v1793_v4  ;;  %v840_v51 = vsel %vm529_vm3, %v758_v60, 0.0  ;;  %v764_v60 = vmul.f32 %v1573_v26, %v1573_v26 }
  0xfe   :  { %v831_v40 = vadd.f32 %v830_v5, %v829_v7  ;;  %v1795_v5 = vpop.f32.mrf.mxu3 }
  0xff   :  { %587 = vst.msk [vmem:[%s2094_s2 + $0x1c8] sm:$0xff] %vm529_vm3, %v1795_v5 }
 0x102   :  { %v406_v9 = vpop.f32.mrf.mxu0  ;;  %v1745_v10 = vpop.f32.mrf.mxu1 }
 0x103   :  { %545 = vst.msk [vmem:[%s2094_s2 + $0x78] sm:$0xff] %vm529_vm3, %v406_v9  ;;  %v631_v14 = vsel %vm529_vm3, %v406_v9, 0.0  ;;  %v754_v17 = vmul.f32 %v406_v9, %v406_v9  ;;  %v760_v9 = vmul.f32 %v1487_v12, %v1487_v12 }
 0x104   :  { %v632_v44 = vadd.f32 %v631_v14, %v630_v8  ;;  %561 = vst.msk [vmem:[%s2094_s2 + $0xf8] sm:$0xff] %vm529_vm3, %v1745_v10 }
 0x105   :  { %v832_v47 = vsel %vm529_vm3, %v754_v17, 0.0  ;;  %v842_v17 = vsel %vm529_vm3, %v759_v56, 0.0  ;;  %v844_v46 = vsel %vm529_vm3, %v760_v9, 0.0  ;;  %v765_v56 = vmul.f32 %v1598_v30, %v1598_v30 }
 0x106   :  { %v634_v49 = vadd.f32 %v633_v45, %v632_v44  ;;  %v833_v50 = vadd.f32 %v832_v47, %v831_v40  ;;  %v643_v40 = vsel %vm529_vm3, %v1487_v12, 0.0  ;;  %v761_v44 = vmul.f32 %v1505_v15, %v1505_v15 }
 0x107   :  { %v645_v47 = vsel %vm529_vm3, %v1505_v15, 0.0  ;;  %v647_v12 = vsel %vm529_vm3, %v1523_v18, 0.0 }
 0x108   :  { %v636_v54 = vadd.f32 %v635_v52, %v634_v49  ;;  %v835_v38 = vadd.f32 %v834_v37, %v833_v50  ;;  %v762_v49 = vmul.f32 %v1523_v18, %v1523_v18  ;;  %v846_v52 = vsel %vm529_vm3, %v761_v44, 0.0 }
 0x109   :  { %v649_v18 = vsel %vm529_vm3, %v1548_v22, 0.0 }
 0x10a   :  { %v638_v61 = vadd.f32 %v637_v58, %v636_v54  ;;  %v837_v1 = vadd.f32 %v836_v55, %v835_v38  ;;  %v1827_v54 = vpop.f32.mrf.mxu2  ;;  %v1829_v38 = vpop.f32.mrf.mxu3  ;;  %v848_v15 = vsel %vm529_vm3, %v762_v49, 0.0 }
 0x10b   :  { %576 = vst.msk [vmem:[%s2094_s2 + $0x170] sm:$0xff] %vm529_vm3, %v1827_v54 }
 0x10c   :  { %v640_v7 = vadd.f32 %v639_v42, %v638_v61  ;;  %v839_v8 = vadd.f32 %v838_v2, %v837_v1  ;;  %588 = vst.msk [vmem:[%s2094_s2 + $0x1d0] sm:$0xff] %vm529_vm3, %v1829_v38  ;;  %v850_v2 = vsel %vm529_vm3, %v763_v33, 0.0  ;;  %v651_v42 = vsel %vm529_vm3, %v1573_v26, 0.0 }
 0x10d   :  { %v655_v26 = vsel %vm529_vm3, %v1623_v34, 0.0 }
 0x10e   :  { %v642_v11 = vadd.f32 %v641_v59, %v640_v7  ;;  %v841_v14 = vadd.f32 %v840_v51, %v839_v8  ;;  %v852_v8 = vsel %vm529_vm3, %v764_v60, 0.0  ;;  %v653_v51 = vsel %vm529_vm3, %v1598_v30, 0.0 }
 0x10f   :  { %v766_v59 = vmul.f32 %v1623_v34, %v1623_v34  ;;  %v657_v34 = vsel %vm529_vm3, %v1648_v39, 0.0  ;;  %v771_v60 = vmul.f32 %v1446_v62, %v1446_v62 }
 0x110   :  { %v644_v3 = vadd.f32 %v643_v40, %v642_v11  ;;  %v843_v45 = vadd.f32 %v842_v17, %v841_v14  ;;  %v854_v14 = vsel %vm529_vm3, %v765_v56, 0.0  ;;  %v767_v17 = vmul.f32 %v1648_v39, %v1648_v39 }
 0x111   :  { %v856_v30 = vsel %vm529_vm3, %v766_v59, 0.0  ;;  %v772_v56 = vmul.f32 %v1466_v6, %v1466_v6  ;;  %v773_v59 = vmul.f32 %v1493_v13, %v1493_v13 }
 0x112   :  { %v845_v50 = vadd.f32 %v844_v46, %v843_v45  ;;  %v646_v37 = vadd.f32 %v645_v47, %v644_v3  ;;  %v1861_v40 = vpop.f32.mrf.mxu2  ;;  %v1863_v44 = vpop.f32.mrf.mxu3  ;;  %v768_v46 = vmul.f32 %v1680_v57, %v1680_v57 }
 0x113   :  { %577 = vst.msk [vmem:[%s2094_s2 + $0x178] sm:$0xff] %vm529_vm3, %v1861_v40 }
 0x114   :  { %v648_v55 = vadd.f32 %v647_v12, %v646_v37  ;;  %v847_v58 = vadd.f32 %v846_v52, %v845_v50  ;;  %589 = vst.msk [vmem:[%s2094_s2 + $0x1d8] sm:$0xff] %vm529_vm3, %v1863_v44  ;;  %v858_v50 = vsel %vm529_vm3, %v767_v17, 0.0  ;;  %v659_v37 = vsel %vm529_vm3, %v1680_v57, 0.0 }
 0x115   :  { %v769_v52 = vmul.f32 %v1713_v48, %v1713_v48  ;;  %v860_v33 = vsel %vm529_vm3, %v768_v46, 0.0 }
 0x116   :  { %v650_v61 = vadd.f32 %v649_v18, %v648_v55  ;;  %v849_v1 = vadd.f32 %v848_v15, %v847_v58  ;;  %v661_v55 = vsel %vm529_vm3, %v1713_v48, 0.0  ;;  %v770_v58 = vmul.f32 %v1745_v10, %v1745_v10 }
 0x117   :  { %v862_v57 = vsel %vm529_vm3, %v769_v52, 0.0  ;;  %v665_v48 = vsel %vm529_vm3, %v1446_v62, 0.0  ;;  %v669_v62 = vsel %vm529_vm3, %v1493_v13, 0.0 }
 0x118   :  { %v652_v22 = vadd.f32 %v651_v42, %v650_v61  ;;  %v851_v7 = vadd.f32 %v850_v2, %v849_v1  ;;  %v663_v61 = vsel %vm529_vm3, %v1745_v10, 0.0 }
 0x11a   :  { %v654_v9 = vadd.f32 %v653_v51, %v652_v22  ;;  %v853_v11 = vadd.f32 %v852_v8, %v851_v7  ;;  %v1895_v1 = vpop.f32.mrf.mxu3  ;;  %v864_v22 = vsel %vm529_vm3, %v770_v58, 0.0  ;;  %v866_v8 = vsel %vm529_vm3, %v771_v60, 0.0 }
 0x11b   :  { %590 = vst.msk [vmem:[%s2094_s2 + $0x1e0] sm:$0xff] %vm529_vm3, %v1895_v1  ;;  %v667_v51 = vsel %vm529_vm3, %v1466_v6, 0.0  ;;  %v671_v6 = vsel %vm529_vm3, %v1511_v16, 0.0 }
 0x11c   :  { %v656_v3 = vadd.f32 %v655_v26, %v654_v9  ;;  %v855_v45 = vadd.f32 %v854_v14, %v853_v11  ;;  %v868_v14 = vsel %vm529_vm3, %v772_v56, 0.0  ;;  %v774_v26 = vmul.f32 %v1511_v16, %v1511_v16 }
 0x11d   :  { %v776_v16 = vmul.f32 %v1554_v23, %v1554_v23  ;;  %v681_v56 = vsel %vm529_vm3, %v1629_v35, 0.0 }
 0x11e   :  { %v658_v47 = vadd.f32 %v657_v34, %v656_v3  ;;  %v857_v49 = vadd.f32 %v856_v30, %v855_v45  ;;  %v870_v45 = vsel %vm529_vm3, %v773_v59, 0.0  ;;  %v775_v30 = vmul.f32 %v1529_v19, %v1529_v19 }
 0x11f   :  { %v872_v13 = vsel %vm529_vm3, %v774_v26, 0.0  ;;  %v876_v58 = vsel %vm529_vm3, %v776_v16, 0.0  ;;  %v691_v16 = vsel %vm529_vm3, %v1793_v4, 0.0 }
 0x120   :  { %v859_v39 = vadd.f32 %v858_v50, %v857_v49  ;;  %v660_v12 = vadd.f32 %v659_v37, %v658_v47  ;;  %v673_v49 = vsel %vm529_vm3, %v1529_v19, 0.0  ;;  %v874_v52 = vsel %vm529_vm3, %v775_v30, 0.0 }
 0x121   :  { %v677_v19 = vsel %vm529_vm3, %v1579_v27, 0.0 }
 0x122   :  { %v861_v15 = vadd.f32 %v860_v33, %v859_v39  ;;  %v662_v18 = vadd.f32 %v661_v55, %v660_v12  ;;  %v1922_v34 = vpop.f32.mrf.mxu3  ;;  %v675_v39 = vsel %vm529_vm3, %v1554_v23, 0.0  ;;  %v777_v12 = vmul.f32 %v1579_v27, %v1579_v27 }
 0x123   :  { %591 = vst.msk [vmem:[%s2094_s2 + $0x1e8] sm:$0xff] %vm529_vm3, %v1922_v34  ;;  %v679_v23 = vsel %vm529_vm3, %v1604_v31, 0.0 }
 0x124   :  { %v863_v2 = vadd.f32 %v862_v57, %v861_v15  ;;  %v664_v42 = vadd.f32 %v663_v61, %v662_v18  ;;  %v778_v15 = vmul.f32 %v1604_v31, %v1604_v31  ;;  %v878_v57 = vsel %vm529_vm3, %v777_v12, 0.0 }
 0x125   :  { %v779_v61 = vmul.f32 %v1629_v35, %v1629_v35  ;;  %v780_v31 = vmul.f32 %v1654_v41, %v1654_v41  ;;  %v685_v35 = vsel %vm529_vm3, %v1688_v63, 0.0  ;;  %v786_v12 = vmul.f32 %v1861_v40, %v1861_v40 }
 0x126   :  { %v666_v7 = vadd.f32 %v665_v48, %v664_v42  ;;  %v865_v10 = vadd.f32 %v864_v22, %v863_v2  ;;  %v880_v27 = vsel %vm529_vm3, %v778_v15, 0.0  ;;  %v788_v15 = vmul.f32 %v1556_v24, %v1556_v24 }
 0x128   :  { %v668_v9 = vadd.f32 %v667_v51, %v666_v7  ;;  %v867_v11 = vadd.f32 %v866_v8, %v865_v10  ;;  %v882_v10 = vsel %vm529_vm3, %v779_v61, 0.0  ;;  %v683_v8 = vsel %vm529_vm3, %v1654_v41, 0.0 }
 0x129   :  { %v781_v51 = vmul.f32 %v1688_v63, %v1688_v63  ;;  %v687_v41 = vsel %vm529_vm3, %v1721_v29, 0.0 }
 0x12a   :  { %v670_v17 = vadd.f32 %v669_v62, %v668_v9  ;;  %v869_v3 = vadd.f32 %v868_v14, %v867_v11  ;;  %v1949_v2 = vpop.f32.mrf.mxu3  ;;  %v884_v11 = vsel %vm529_vm3, %v780_v31, 0.0  ;;  %v782_v14 = vmul.f32 %v1721_v29, %v1721_v29 }
 0x12b   :  { %592 = vst.msk [vmem:[%s2094_s2 + $0x1f0] sm:$0xff] %vm529_vm3, %v1949_v2  ;;  %v784_v29 = vmul.f32 %v1793_v4, %v1793_v4 }
 0x12c   :  { %v672_v46 = vadd.f32 %v671_v6, %v670_v17  ;;  %v871_v47 = vadd.f32 %v870_v45, %v869_v3  ;;  %v886_v17 = vsel %vm529_vm3, %v781_v51, 0.0  ;;  %v783_v3 = vmul.f32 %v1754_v21, %v1754_v21 }
 0x12d   :  { %v888_v63 = vsel %vm529_vm3, %v782_v14, 0.0  ;;  %v703_v51 = vsel %vm529_vm3, %v1606_v32, 0.0  ;;  %v792_v14 = vmul.f32 %v1656_v43, %v1656_v43 }
 0x12e   :  { %v674_v50 = vadd.f32 %v673_v49, %v672_v46  ;;  %v873_v37 = vadd.f32 %v872_v13, %v871_v47  ;;  %v689_v46 = vsel %vm529_vm3, %v1754_v21, 0.0  ;;  %v890_v49 = vsel %vm529_vm3, %v783_v3, 0.0 }
 0x12f   :  { %v693_v21 = vsel %vm529_vm3, %v1827_v54, 0.0 }
 0x130   :  { %v676_v33 = vadd.f32 %v675_v39, %v674_v50  ;;  %v875_v55 = vadd.f32 %v874_v52, %v873_v37  ;;  %v785_v50 = vmul.f32 %v1827_v54, %v1827_v54  ;;  %v892_v39 = vsel %vm529_vm3, %v784_v29, 0.0 }
 0x131   :  { %v697_v54 = vsel %vm529_vm3, %v1531_v20, 0.0 }
 0x132   :  { %v877_v18 = vadd.f32 %v876_v58, %v875_v55  ;;  %v678_v60 = vadd.f32 %v677_v19, %v676_v33  ;;  %v1976_v45 = vpop.f32.mrf.mxu3  ;;  %v787_v58 = vmul.f32 %v1531_v20, %v1531_v20  ;;  %v894_v4 = vsel %vm529_vm3, %v785_v50, 0.0 }
 0x133   :  { %593 = vst.msk [vmem:[%s2094_s2 + $0x1f8] sm:$0xff] %vm529_vm3, %v1976_v45  ;;  %v695_v19 = vsel %vm529_vm3, %v1861_v40, 0.0  ;;  %v789_v40 = vmul.f32 %v1581_v28, %v1581_v28  ;;  %v790_v20 = vmul.f32 %v1606_v32, %v1606_v32  ;;  %v707_v32 = vsel %vm529_vm3, %v1656_v43, 0.0  ;;  %s1240_s2 = smov [#allocation2]  }
 0x134   :  { %v680_v42 = vadd.f32 %v679_v23, %v678_v60  ;;  %v879_v48 = vadd.f32 %v878_v57, %v877_v18  ;;  %v896_v57 = vsel %vm529_vm3, %v786_v12, 0.0  ;;  %v711_v43 = vsel %vm529_vm3, %v1723_v53, 0.0  ;;  %s945_s20 = sshll.u32 %s1240_s2, 4  ;;  %s946_s20 = int_to_ptr.vmem [resolvable:$true] %s945_s20 }
 0x135   :  { %v797_v12 = vmul.f32 %v1829_v38, %v1829_v38 }
 0x136   :  { %v682_v22 = vadd.f32 %v681_v56, %v680_v42  ;;  %v881_v7 = vadd.f32 %v880_v27, %v879_v48  ;;  %v898_v42 = vsel %vm529_vm3, %v787_v58, 0.0  ;;  %v699_v48 = vsel %vm529_vm3, %v1556_v24, 0.0 }
 0x137   :  { %v900_v27 = vsel %vm529_vm3, %v788_v15, 0.0  ;;  %v902_v24 = vsel %vm529_vm3, %v789_v40, 0.0 }
 0x138   :  { %v684_v59 = vadd.f32 %v683_v8, %v682_v22  ;;  %v883_v9 = vadd.f32 %v882_v10, %v881_v7  ;;  %v701_v22 = vsel %vm529_vm3, %v1581_v28, 0.0  ;;  %v1239_v8 = vmov 0.0  }
 0x139   :  { %599 = vst.msk [vmem:[#allocation2] sm:$0x1] %vm598_vm4, %v1239_v8 }
 0x13a   :  { %v686_v62 = vadd.f32 %v685_v35, %v684_v59  ;;  %v885_v26 = vadd.f32 %v884_v11, %v883_v9  ;;  %v791_v59 = vmul.f32 %v1631_v36, %v1631_v36  ;;  %600 = vst.msk [vmem:[#allocation4] sm:$0x1] %vm598_vm4, %v1239_v8  ;;  %v904_v11 = vsel %vm529_vm3, %v790_v20, 0.0 }
 0x13b   :  { %v705_v35 = vsel %vm529_vm3, %v1631_v36, 0.0  ;;  %v709_v36 = vsel %vm529_vm3, %v1690_v0, 0.0  ;;  %v802_v20 = vmul.f32 %v1976_v45, %v1976_v45 }
 0x13c   :  { %v688_v6 = vadd.f32 %v687_v41, %v686_v62  ;;  %v887_v30 = vadd.f32 %v886_v17, %v885_v26  ;;  %v906_v17 = vsel %vm529_vm3, %v791_v59, 0.0  ;;  %v793_v41 = vmul.f32 %v1690_v0, %v1690_v0 }
 0x13d   :  { %v713_v0 = vsel %vm529_vm3, %v1756_v25, 0.0  ;;  %v928_v59 = vsel %vm529_vm3, %v802_v20, 0.0 }
 0x13e   :  { %v889_v47 = vadd.f32 %v888_v63, %v887_v30  ;;  %v690_v13 = vadd.f32 %v689_v46, %v688_v6  ;;  %v908_v30 = vsel %vm529_vm3, %v792_v14, 0.0  ;;  %v794_v63 = vmul.f32 %v1723_v53, %v1723_v53 }
 0x13f   :  { %v715_v53 = vsel %vm529_vm3, %v1795_v5, 0.0 }
 0x140   :  { %v891_v37 = vadd.f32 %v890_v49, %v889_v47  ;;  %v692_v52 = vadd.f32 %v691_v16, %v690_v13  ;;  %v910_v47 = vsel %vm529_vm3, %v793_v41, 0.0  ;;  %v795_v13 = vmul.f32 %v1756_v25, %v1756_v25  ;;  %v601_v41 = vld [vmem:[#allocation2] sm:$0x1] }
 0x141   :  { %v912_v50 = vsel %vm529_vm3, %v794_v63, 0.0  ;;  %v717_v25 = vsel %vm529_vm3, %v1829_v38, 0.0  ;;  %v721_v38 = vsel %vm529_vm3, %v1895_v1, 0.0 }
 0x142   :  { %v893_v33 = vadd.f32 %v892_v39, %v891_v37  ;;  %v694_v55 = vadd.f32 %v693_v21, %v692_v52  ;;  %v796_v37 = vmul.f32 %v1795_v5, %v1795_v5  ;;  %v914_v21 = vsel %vm529_vm3, %v795_v13, 0.0 }
 0x143   :  { %v719_v5 = vsel %vm529_vm3, %v1863_v44, 0.0 }
 0x144   :  { %v895_v18 = vadd.f32 %v894_v4, %v893_v33  ;;  %v696_v60 = vadd.f32 %v695_v19, %v694_v55  ;;  %v916_v58 = vsel %vm529_vm3, %v796_v37, 0.0  ;;  %v798_v4 = vmul.f32 %v1863_v44, %v1863_v44 }
 0x145   :  { %v723_v44 = vsel %vm529_vm3, %v1922_v34, 0.0 }
 0x146   :  { %v698_v23 = vadd.f32 %v697_v54, %v696_v60  ;;  %v897_v61 = vadd.f32 %v896_v57, %v895_v18  ;;  %v918_v18 = vsel %vm529_vm3, %v797_v12, 0.0  ;;  %v799_v60 = vmul.f32 %v1895_v1, %v1895_v1 }
 0x147   :  { %v725_v1 = vsel %vm529_vm3, %v1949_v2, 0.0 }
 0x148   :  { %v700_v56 = vadd.f32 %v699_v48, %v698_v23  ;;  %v899_v31 = vadd.f32 %v898_v42, %v897_v61  ;;  %v920_v23 = vsel %vm529_vm3, %v798_v4, 0.0  ;;  %v800_v61 = vmul.f32 %v1922_v34, %v1922_v34 }
 0x149   :  { %v922_v40 = vsel %vm529_vm3, %v799_v60, 0.0  ;;  %v727_v34 = vsel %vm529_vm3, %v1976_v45, 0.0 }
 0x14a   :  { %v702_v7 = vadd.f32 %v701_v22, %v700_v56  ;;  %v901_v10 = vadd.f32 %v900_v27, %v899_v31  ;;  %v801_v27 = vmul.f32 %v1949_v2, %v1949_v2  ;;  %v924_v22 = vsel %vm529_vm3, %v800_v61, 0.0 }
 0x14c   :  { %v704_v28 = vadd.f32 %v703_v51, %v702_v7  ;;  %v903_v9 = vadd.f32 %v902_v24, %v901_v10  ;;  %v926_v8 = vsel %vm529_vm3, %v801_v27, 0.0 }
 0x14e   :  { %v706_v62 = vadd.f32 %v705_v35, %v704_v28  ;;  %v905_v26 = vadd.f32 %v904_v11, %v903_v9 }
 0x150   :  { %v708_v3 = vadd.f32 %v707_v32, %v706_v62  ;;  %v907_v6 = vadd.f32 %v906_v17, %v905_v26 }
 0x152   :  { %v909_v46 = vadd.f32 %v908_v30, %v907_v6  ;;  %v710_v29 = vadd.f32 %v709_v36, %v708_v3  ;;  %v738_v6 = vld [vmem:[#allocation4] sm:$0x1] }
 0x154   :  { %v712_v49 = vadd.f32 %v711_v43, %v710_v29  ;;  %v911_v16 = vadd.f32 %v910_v47, %v909_v46 }
 0x156   :  { %v714_v52 = vadd.f32 %v713_v0, %v712_v49  ;;  %v913_v39 = vadd.f32 %v912_v50, %v911_v16 }
 0x158   :  { %v716_v33 = vadd.f32 %v715_v53, %v714_v52  ;;  %v915_v55 = vadd.f32 %v914_v21, %v913_v39 }
 0x15a   :  { %v718_v19 = vadd.f32 %v717_v25, %v716_v33  ;;  %v917_v15 = vadd.f32 %v916_v58, %v915_v55 }
 0x15c   :  { %v720_v54 = vadd.f32 %v719_v5, %v718_v19  ;;  %v919_v57 = vadd.f32 %v918_v18, %v917_v15 }
 0x15e   :  { %v921_v42 = vadd.f32 %v920_v23, %v919_v57  ;;  %v722_v48 = vadd.f32 %v721_v38, %v720_v54 }
 0x160   :  { %v923_v56 = vadd.f32 %v922_v40, %v921_v42  ;;  %v724_v31 = vadd.f32 %v723_v44, %v722_v48 }
 0x162   :  { %v925_v7 = vadd.f32 %v924_v22, %v923_v56  ;;  %v726_v10 = vadd.f32 %v725_v1, %v724_v31 }
 0x164   :  { %v927_v24 = vadd.f32 %v926_v8, %v925_v7  ;;  %v728_v51 = vadd.f32 %v727_v34, %v726_v10 }
 0x166   :  { %v729_v28 = vrot.slane %v728_v51, 4  ;;  %v929_v9 = vadd.f32 %v928_v59, %v927_v24 }
 0x168   :  { %v730_v11 = vadd.f32 %v729_v28, %v728_v51  ;;  %v930_v35 = vrot.slane %v929_v9, 4 }
 0x16a   :  { %v731_v14 = vrot.slane %v730_v11, 2  ;;  %v931_v2 = vadd.f32 %v930_v35, %v929_v9 }
 0x16c   :  { %v732_v62 = vadd.f32 %v731_v14, %v730_v11  ;;  %v932_v26 = vrot.slane %v931_v2, 2 }
 0x16e   :  { %v733_v17 = vrot.slane %v732_v62, 1  ;;  %v933_v32 = vadd.f32 %v932_v26, %v931_v2 }
 0x170   :  { %v934_v45 = vrot.slane %v933_v32, 1  ;;  %v734_v3 = vadd.f32 %v733_v17, %v732_v62 }
 0x172   :  { %v735_v30 = vadd.f32 %v734_v3, %v601_v41  ;;  %v935_v36 = vadd.f32 %v934_v45, %v933_v32 }
 0x174   :  { %737 = vst.msk [vmem:[#allocation2] sm:$0x1] %vm598_vm4, %v735_v30  ;;  %v936_v63 = vadd.f32 %v935_v36, %v738_v6 }
 0x175   :  { %950 = dma.vmem_to_hbm [thread:$0]  %s946_s20, 16, %s948_s23, [#allocation3]  }
 0x176   :  { %937 = vst.msk [vmem:[#allocation4] sm:$0x1] %vm598_vm4, %v936_v63 }
 0x177   :  { %961 = dma.vmem_to_hbm [thread:$0]  %s957_s1, 16, %s959_s27, [#allocation5]  }
 0x178   :  { %1234 = dma.done.wait [#allocation3], 16  }
 0x179   :  { %1235 = vsyncadd [#allocation3], 4294967280 }
 0x17a   :  { %1236 = dma.done.wait [#allocation5], 16  }
 0x17b   :  { %1237 = vsyncadd [#allocation5], 4294967280 }
 0x17c   :  { %972 = vsyncpa [#allocation3], 1 }
 0x17d   :  { %973 = vsyncpa [#allocation5], 1 }

</bundles_post_ra>
